<compile_context>
chip_gen: v7x
topology: tpu7x:2x2x1
jax: 0.10.0
libtpu: 0.0.40
codegen_flags: <defaults>
</compile_context>

<pallas_src>
import jax
import jax.numpy as jnp
from jax.experimental import pallas as pl
from jax.experimental.pallas import tpu as pltpu

_EPS = 1e-7
_LANES = 128
_SUBLANES = 8
_TILE_R = 2048  # rows per tile: 2048*128*4B = 1 MiB per input per pipeline buffer


def _round_up(x, m):
    return (x + m - 1) // m * m


def _make_wbce_kernel(tile_r, tiles_per_chunk, total_tiles, rows_full,
                      tail_cols, first_masked, grid_tiles):
    """Build the kernel with all shape-derived constants baked in statically."""

    def kernel(w_ref, p_ref, t_ref, out_ref):
        c = pl.program_id(0)                 # chunk (parallel across TCs on v7x)
        i = pl.program_id(1)                 # tile within chunk (reduction axis)
        g = c * tiles_per_chunk + i          # global tile index

        # Output block is resident across the reduction axis -> accumulator.
        @pl.when(i == 0)
        def _init():
            out_ref[...] = jnp.zeros_like(out_ref)

        p = p_ref[...].astype(jnp.float32)
        t = t_ref[...].astype(jnp.float32)
        w0 = w_ref[0, 0]
        w1 = w_ref[0, 1]

        ln0 = jnp.log(1.0 - p + _EPS)
        ln1 = jnp.log(p + _EPS)
        # Algebraically identical to w0*(1-t)*ln0 + w1*t*ln1, fewer VALU ops.
        term = w0 * ln0 + t * (w1 * ln1 - w0 * ln0)

        def accumulate(x):
            # Fold TILE_R rows into an (8, 128) lane-parallel partial sum (pure
            # VPU adds); the cross-lane reduce is deferred to the wrapper.
            out_ref[...] += jnp.sum(x.reshape(-1, _SUBLANES, _LANES), axis=0)[None]

        if first_masked < grid_tiles:
            # Only the last data tile (ragged) and any redundant tiles from the
            # chunk split need masking; interior tiles skip the extra VPU work.
            @pl.when(g >= first_masked)
            def _masked():
                row = (jax.lax.broadcasted_iota(jnp.int32, (tile_r, _LANES), 0)
                       + g * tile_r)
                col = jax.lax.broadcasted_iota(jnp.int32, (tile_r, _LANES), 1)
                valid = (row < rows_full) | ((row == rows_full) & (col < tail_cols))
                accumulate(jnp.where(valid, term, 0.0))

            @pl.when(g < first_masked)
            def _unmasked():
                accumulate(term)
        else:
            accumulate(term)

    return kernel


@jax.jit
def wbce_loss(preds, trues, weights):
    """WBCE.forward(preds, trues) with smooth=None and (1, 2) weights."""
    assert preds.shape == trues.shape, "_assert_inputs: shape mismatch"
    n = preds.size  # static under jit

    p_flat = preds.reshape(-1)
    t_flat = trues.reshape(-1)

    rem = n % _LANES
    if rem:
        # Only hit when numel is not a multiple of 128 (rare for image tensors).
        pad = _LANES - rem
        p_flat = jnp.pad(p_flat, (0, pad))
        t_flat = jnp.pad(t_flat, (0, pad))

    rows2d = (n + _LANES - 1) // _LANES
    p2d = p_flat.reshape(rows2d, _LANES)
    t2d = t_flat.reshape(rows2d, _LANES)

    # Sublane multiple depends on dtype packing (f32:8, bf16:16, 8-bit:32).
    itemsize = min(jnp.dtype(preds.dtype).itemsize, jnp.dtype(trues.dtype).itemsize)
    sublane_mult = max(_SUBLANES, 32 // max(int(itemsize), 1))
    tile_r = min(_TILE_R, _round_up(rows2d, sublane_mult))

    total_tiles = (rows2d + tile_r - 1) // tile_r
    nc = 2 if total_tiles >= 2 else 1        # shard across v7x's 2 TensorCores
    tiles_per_chunk = (total_tiles + nc - 1) // nc
    grid_tiles = nc * tiles_per_chunk        # may exceed total_tiles by < nc

    rows_full = n // _LANES                  # fully valid 128-lane rows
    tail_cols = n % _LANES                   # valid lanes in the partial row
    ragged = (rows2d % tile_r != 0) or (tail_cols != 0)
    first_masked = (total_tiles - 1) if ragged else total_tiles

    kernel = _make_wbce_kernel(tile_r, tiles_per_chunk, total_tiles, rows_full,
                               tail_cols, first_masked, grid_tiles)

    def data_map(c, i):
        g = c * tiles_per_chunk + i
        # Clamp redundant tiles (from the chunk split) onto the last real tile;
        # their contribution is fully masked to zero inside the kernel.
        return (jnp.minimum(g, total_tiles - 1), 0)

    w = weights.astype(jnp.float32).reshape(1, 2)

    bytes_in = n * (jnp.dtype(preds.dtype).itemsize + jnp.dtype(trues.dtype).itemsize)
    partials = pl.pallas_call(
        kernel,
        out_shape=jax.ShapeDtypeStruct((nc, _SUBLANES, _LANES), jnp.float32),
        grid=(nc, tiles_per_chunk),
        in_specs=[
            pl.BlockSpec(memory_space=pltpu.SMEM),        # weights (1, 2)
            pl.BlockSpec((tile_r, _LANES), data_map),     # preds tiles
            pl.BlockSpec((tile_r, _LANES), data_map),     # trues tiles
        ],
        out_specs=pl.BlockSpec((1, _SUBLANES, _LANES), lambda c, i: (c, 0, 0)),
        compiler_params=pltpu.CompilerParams(
            dimension_semantics=("parallel", "arbitrary")),
        cost_estimate=pl.CostEstimate(
            flops=10 * n,
            transcendentals=2 * n,
            bytes_accessed=int(bytes_in) + nc * _SUBLANES * _LANES * 4),
    )(w, p2d, t2d)

    # Tiny final reduction + mean + negate (scalar XLA work).
    return -(jnp.sum(partials) / n)


def _wbce_ref(preds, trues, weights):
    """Pure-JAX reference mirroring the PyTorch forward (smooth=None)."""
    ln0 = jnp.log(1.0 - preds + _EPS)
    ln1 = jnp.log(preds + _EPS)
    w = weights.astype(jnp.float32)
    ln = w[..., 0] * (1.0 - trues) * ln0 + w[..., 1] * trues * ln1
    return -jnp.mean(ln)


if __name__ == "__main__":
    key = jax.random.PRNGKey(0)
    k_p, k_t, k_p2, k_t2 = jax.random.split(key, 4)

    # Deterministic default parameter: weights = [[1, 1]]  (weights_path=None).
    weights = jnp.array([[1.0, 1.0]], dtype=jnp.float32)

    # Small NCHW demo shape (single-tile path).
    B, C, H, W = 2, 4, 16, 16
    preds = jax.random.uniform(k_p, (B, C, H, W), dtype=jnp.float32,
                               minval=0.01, maxval=0.99)
    trues = (jax.random.uniform(k_t, (B, C, H, W)) > 0.5).astype(jnp.float32)

    loss = wbce_loss(preds, trues, weights)
    jax.block_until_ready(loss)
    ref = _wbce_ref(preds, trues, weights)
    assert jnp.allclose(loss, ref, rtol=1e-5, atol=1e-6), (loss, ref)

    # Larger case exercising the multi-tile grid, the 2-chunk parallel split
    # and the masked ragged last tile.
    B2, C2, H2, W2 = 2, 4, 400, 128
    preds2 = jax.random.uniform(k_p2, (B2, C2, H2, W2), dtype=jnp.float32,
                                minval=0.01, maxval=0.99)
    trues2 = (jax.random.uniform(k_t2, (B2, C2, H2, W2)) > 0.5).astype(jnp.float32)

    loss2 = wbce_loss(preds2, trues2, weights)
    jax.block_until_ready(loss2)
    ref2 = _wbce_ref(preds2, trues2, weights)
    assert jnp.allclose(loss2, ref2, rtol=1e-4, atol=1e-6), (loss2, ref2)

    print("KERNEL_OK")
</pallas_src>

<mosaic_0001>
module attributes {stable_mosaic.version = 11 : i64} {
  func.func @kernel(%arg0: i32, %arg1: i32, %arg2: memref<1x2xf32, #tpu.memory_space<smem>>, %arg3: memref<16x128xf32, #tpu.memory_space<vmem>>, %arg4: memref<16x128xf32, #tpu.memory_space<vmem>>, %arg5: memref<1x8x128xf32, #tpu.memory_space<vmem>>) attributes {dimension_semantics = [#tpu.dimension_semantics<parallel>, #tpu.dimension_semantics<arbitrary>], iteration_bounds = array<i64: 1, 1>, scalar_prefetch = 0 : i64, scratch_operands = 0 : i64, tpu.core_type = #tpu.core_type<tc>, window_params = [{transform_indices = @transform_0, window_bounds = array<i64: 1, 2>}, {transform_indices = @transform_1, window_bounds = array<i64: 16, 128>}, {transform_indices = @transform_2, window_bounds = array<i64: 16, 128>}, {transform_indices = @transform_3, window_bounds = array<i64: 1, 8, 128>}]} {
    %c0_i32 = arith.constant 0 : i32
    %0 = arith.cmpi eq, %arg1, %c0_i32 : i32
    %1 = arith.extui %0 : i1 to i32
    %c0_i32_0 = arith.constant 0 : i32
    %2 = arith.cmpi ne, %1, %c0_i32_0 : i32
    scf.if %2 {
      %cst_16 = arith.constant 0.000000e+00 : f32
      %30 = vector.broadcast %cst_16 : f32 to vector<1x8x128xf32>
      %c0_17 = arith.constant 0 : index
      %c0_18 = arith.constant 0 : index
      %c0_19 = arith.constant 0 : index
      %31 = vector.load %arg5[%c0_17, %c0_18, %c0_19] : memref<1x8x128xf32, #tpu.memory_space<vmem>>, vector<1x8x128xf32>
      tpu.vector_store %arg5[%c0_17, %c0_18, %c0_19], %30 {strides = array<i32>} : memref<1x8x128xf32, #tpu.memory_space<vmem>>, vector<1x8x128xf32>,
    } else {
    }
    %c0 = arith.constant 0 : index
    %c0_1 = arith.constant 0 : index
    %3 = vector.load %arg3[%c0, %c0_1] : memref<16x128xf32, #tpu.memory_space<vmem>>, vector<16x128xf32>
    %c0_2 = arith.constant 0 : index
    %c0_3 = arith.constant 0 : index
    %4 = vector.load %arg4[%c0_2, %c0_3] : memref<16x128xf32, #tpu.memory_space<vmem>>, vector<16x128xf32>
    %c0_4 = arith.constant 0 : index
    %c0_5 = arith.constant 0 : index
    %5 = memref.load %arg2[%c0_4, %c0_5] : memref<1x2xf32, #tpu.memory_space<smem>>
    %c0_6 = arith.constant 0 : index
    %c1 = arith.constant 1 : index
    %6 = memref.load %arg2[%c0_6, %c1] : memref<1x2xf32, #tpu.memory_space<smem>>
    %cst = arith.constant 1.000000e+00 : f32
    %7 = vector.broadcast %cst : f32 to vector<16x128xf32>
    %8 = arith.subf %7, %3 : vector<16x128xf32>
    %cst_7 = arith.constant 1.000000e-07 : f32
    %9 = vector.broadcast %cst_7 : f32 to vector<16x128xf32>
    %10 = arith.addf %8, %9 : vector<16x128xf32>
    %11 = math.log %10 : vector<16x128xf32>
    %cst_8 = arith.constant 1.000000e-07 : f32
    %12 = vector.broadcast %cst_8 : f32 to vector<16x128xf32>
    %13 = arith.addf %3, %12 : vector<16x128xf32>
    %14 = math.log %13 : vector<16x128xf32>
    %15 = vector.broadcast %5 : f32 to vector<16x128xf32>
    %16 = arith.mulf %15, %11 : vector<16x128xf32>
    %17 = vector.broadcast %6 : f32 to vector<16x128xf32>
    %18 = arith.mulf %17, %14 : vector<16x128xf32>
    %19 = vector.broadcast %5 : f32 to vector<16x128xf32>
    %20 = arith.mulf %19, %11 : vector<16x128xf32>
    %21 = arith.subf %18, %20 : vector<16x128xf32>
    %22 = arith.mulf %4, %21 : vector<16x128xf32>
    %23 = arith.addf %16, %22 : vector<16x128xf32>
    %c0_9 = arith.constant 0 : index
    %c0_10 = arith.constant 0 : index
    %c0_11 = arith.constant 0 : index
    %24 = vector.load %arg5[%c0_9, %c0_10, %c0_11] : memref<1x8x128xf32, #tpu.memory_space<vmem>>, vector<1x8x128xf32>
    %25 = vector.shape_cast %23 : vector<16x128xf32> to vector<2x8x128xf32>
    %cst_12 = arith.constant dense<0.000000e+00> : vector<8x128xf32>
    %26 = vector.multi_reduction <add>, %25, %cst_12 [0] : vector<2x8x128xf32> to vector<8x128xf32>
    %27 = vector.shape_cast %26 : vector<8x128xf32> to vector<1x8x128xf32>
    %28 = arith.addf %24, %27 : vector<1x8x128xf32>
    %c0_13 = arith.constant 0 : index
    %c0_14 = arith.constant 0 : index
    %c0_15 = arith.constant 0 : index
    %29 = vector.load %arg5[%c0_13, %c0_14, %c0_15] : memref<1x8x128xf32, #tpu.memory_space<vmem>>, vector<1x8x128xf32>
    tpu.vector_store %arg5[%c0_13, %c0_14, %c0_15], %28 {strides = array<i32>} : memref<1x8x128xf32, #tpu.memory_space<vmem>>, vector<1x8x128xf32>,
    return
  }
  func.func @transform_0(%arg0: i32, %arg1: i32) -> (i32, i32) {
    %c0_i32 = arith.constant 0 : i32
    %c0_i32_0 = arith.constant 0 : i32
    %c0_i32_1 = arith.constant 0 : i32
    return %c0_i32, %c0_i32_0 : i32, i32
  }
  func.func @transform_1(%arg0: i32, %arg1: i32) -> (i32, i32) {
    %c1_i32 = arith.constant 1 : i32
    %0 = arith.muli %arg0, %c1_i32 : i32
    %1 = arith.addi %0, %arg1 : i32
    %c0_i32 = arith.constant 0 : i32
    %2 = arith.minsi %1, %c0_i32 : i32
    %c0_i32_0 = arith.constant 0 : i32
    %c0_i32_1 = arith.constant 0 : i32
    return %2, %c0_i32_0 : i32, i32
  }
  func.func @transform_2(%arg0: i32, %arg1: i32) -> (i32, i32) {
    %c1_i32 = arith.constant 1 : i32
    %0 = arith.muli %arg0, %c1_i32 : i32
    %1 = arith.addi %0, %arg1 : i32
    %c0_i32 = arith.constant 0 : i32
    %2 = arith.minsi %1, %c0_i32 : i32
    %c0_i32_0 = arith.constant 0 : i32
    %c0_i32_1 = arith.constant 0 : i32
    return %2, %c0_i32_0 : i32, i32
  }
  func.func @transform_3(%arg0: i32, %arg1: i32) -> (i32, i32, i32) {
    %c0_i32 = arith.constant 0 : i32
    %c0_i32_0 = arith.constant 0 : i32
    %c0_i32_1 = arith.constant 0 : i32
    return %arg0, %c0_i32, %c0_i32_0 : i32, i32, i32
  }
}

</mosaic_0001>

<bundles_post_ra>
// kernel: wbce_loss.1
= control target key start
LH: loop header
LB: loop body
LE: loop exit
PB: predicated region body
PF: predicated region fallthrough
CT: control target
= control target key end

     0   :  { %8 = vsyncpa [#allocation3], 0  ;;  %s213_s0 = inlined_call_operand.vmem [shape: f32[1,2], index: 0, kind: input, shape index: {}]   ;;  %s214_s1 = inlined_call_operand.vmem [shape: f32[16,128], index: 1, kind: input, shape index: {}]   ;;  %s215_s2 = inlined_call_operand.vmem [shape: f32[16,128], index: 2, kind: input, shape index: {}]   ;;  %s216_s3 = inlined_call_operand.vmem [shape: f32[1,8,128], index: 3, kind: output, shape index: {}]  }
   0x1   :  { %s15_s14 = sshll.u32 %s213_s0, 4  ;;  %s16_s14 = int_to_ptr.vmem [resolvable:$true] %s15_s14 }
   0x2   :  { %s160_s15 = scalar_lea.vmem %s16_s14, 16  ;;  %p165_p1 = scmp.lt.s32.totalorder %s16_s14, %s16_s14 }
   0x3   :  { %p161_p0 = scmp.ne.s32.totalorder %s16_s14, %s160_s15  ;;  %p166_p2 = scmp.lt.s32.totalorder %s160_s15, %s160_s15 }
   0x5   :  { %p167_p3 = por %p166_p2, %p165_p1 }
   0x7   :  { %p168_p4 = pnand %p167_p3, %p161_p0 }
   0x9   :  { %171 = shalt.err (!%p168_p4)
}
   0xa   :  { %s174_s16 = smov [#allocation2]  }
   0xb   :  { %18 = dma.vmem_to_smem %s16_s14, 16, %s174_s16, [#allocation3]  }
   0xc   :  { %172 = dma.done.wait [#allocation3], 16  }
   0xd   :  { %173 = vsyncadd [#allocation3], 4294967280 }
   0xe   :  { %50 = sfence }
   0xf   :  { %v96_v0 = vld [vmem:[%s214_s1] sm:$0xff]  ;;  %v97_v1 = vld [vmem:[%s214_s1 + $0x8] sm:$0xff]  ;;  %s149_s0 = sld [smem:[#allocation2 + $0x1]]  ;;  %s100_s21 = sld [smem:[#allocation2]] }
  0x10   :  { %v102_v2 = vsub.f32 1.0, %v96_v0  ;;  %v103_v3 = vsub.f32 1.0, %v97_v1  ;;  %v110_v4 = vadd.f32 1e-07, %v96_v0  ;;  %v111_v7 = vadd.f32 1e-07, %v97_v1 }
  0x11   :  { %v98_v20 = vld [vmem:[%s215_s2] sm:$0xff]  ;;  %v99_v24 = vld [vmem:[%s215_s2 + $0x8] sm:$0xff] }
  0x12   :  { %v104_v5 = vadd.f32 1e-07, %v102_v2  ;;  %v105_v6 = vadd.f32 1e-07, %v103_v3  ;;  %152 = vlog2.f32 %v110_v4 }
  0x14   :  { %154 = vlog2.f32 %v104_v5 }
  0x15   :  { %156 = vlog2.f32 %v105_v6  ;;  %v119_v9 = vstv %s149_s0  ;;  %v116_v12 = vstv %s100_s21 }
  0x16   :  { %158 = vlog2.f32 %v111_v7 }
  0x1c   :  { %v153_v8 = vpop.eup %152 }
  0x1d   :  { %v113_v11 = vmul.f32 0.6931472, %v153_v8 }
  0x1e   :  { %v155_v10 = vpop.eup %154 }
  0x1f   :  { %v157_v13 = vpop.eup %156  ;;  %v107_v14 = vmul.f32 0.6931472, %v155_v10  ;;  %v120_v17 = vmul.f32 %v119_v9, %v113_v11 }
  0x20   :  { %v159_v15 = vpop.eup %158  ;;  %v109_v16 = vmul.f32 0.6931472, %v157_v13 }
  0x21   :  { %v115_v18 = vmul.f32 0.6931472, %v159_v15  ;;  %v117_v19 = vmul.f32 %v116_v12, %v107_v14 }
  0x22   :  { %v118_v21 = vmul.f32 %v116_v12, %v109_v16 }
  0x23   :  { %v121_v22 = vmul.f32 %v119_v9, %v115_v18  ;;  %v122_v23 = vsub.f32 %v120_v17, %v117_v19 }
  0x25   :  { %v123_v25 = vsub.f32 %v121_v22, %v118_v21  ;;  %v124_v26 = vmul.f32 %v122_v23, %v98_v20 }
  0x27   :  { %v125_v27 = vmul.f32 %v123_v25, %v99_v24  ;;  %v126_v28 = vadd.f32 %v124_v26, %v117_v19 }
  0x29   :  { %v127_v29 = vadd.f32 %v125_v27, %v118_v21 }
  0x2b   :  { %v129_v30 = vadd.f32 %v127_v29, %v126_v28 }
  0x2d   :  { %131 = vst [vmem:[%s216_s3] sm:$0xff] %v129_v30 }
  0x2e   :  { %136 = vsyncpa [#allocation3], 1 }

</bundles_post_ra>
